<compile_context>
chip_gen: v7x
topology: tpu7x:2x2x1
jax: 0.10.0
libtpu: 0.0.40
codegen_flags: <defaults>
</compile_context>

<pallas_src>
import functools

import jax
import jax.numpy as jnp
import numpy as np
from jax.experimental import pallas as pl
from jax.experimental.pallas import tpu as pltpu

IGNORE_INDEX = 255


def _interp_matrix(out_size: int, in_size: int) -> np.ndarray:
    """Dense (out_size, in_size) matrix for 1-D bilinear interp, align_corners=True."""
    A = np.zeros((out_size, in_size), dtype=np.float32)
    if out_size == 1:
        A[0, 0] = 1.0
        return A
    scale = (in_size - 1) / (out_size - 1)
    for i in range(out_size):
        src = i * scale
        i0 = min(int(np.floor(src)), in_size - 1)
        i1 = min(i0 + 1, in_size - 1)
        w1 = src - i0
        A[i, i0] += 1.0 - w1
        A[i, i1] += w1
    return A


def _round_up(x: int, m: int) -> int:
    return ((x + m - 1) // m) * m


def _ce_kernel(x_ref, t_ref, ah_ref, awt_ref, loss_ref, cnt_ref, z_ref, l_ref,
               *, C, hp, tile_h):
    # x_ref   : (1, C*hp, wp) bf16   low-res logits of one sample (free NCHW view); resident over h
    # t_ref   : (1, tile_h, W) int32 labels for this H tile (padded pixels = IGNORE_INDEX)
    # ah_ref  : (tile_h, hp)  bf16   H-interp rows for this tile (zero rows for padded H)
    # awt_ref : (wp, W)       bf16   W-interp matrix, transposed, zero-padded columns
    # loss_ref/cnt_ref : (8, W) f32  per-step per-lane partial sums (summed in JAX)
    # z_ref   : (C, hp, W)    bf16   W-interpolated logits; recomputed once per sample (h == 0)
    # l_ref   : (C, tile_h, W) bf16  upsampled logits slab for this tile
    W = awt_ref.shape[1]

    # ---- Stage 1 (once per sample): W-interp every class, full lane width W on the MXU.
    @pl.when(pl.program_id(1) == 0)
    def _():
        awt = awt_ref[...]
        for c in range(C):
            xc = x_ref[0, c * hp:(c + 1) * hp, :]                     # (hp, wp) bf16
            z_ref[c] = jnp.dot(
                xc, awt, preferred_element_type=jnp.float32).astype(jnp.bfloat16)

    # ---- Phase A (per tile): H-interp each class; store bf16 logits (half the vst bytes).
    ah = ah_ref[...]                                                  # (tile_h, hp) bf16
    for c in range(C):
        lc = jnp.dot(ah, z_ref[c], preferred_element_type=jnp.float32)  # (tile_h, W) f32
        l_ref[c] = lc.astype(jnp.bfloat16)

    # ---- Phase B: cross-entropy epilogue in (8, W) row chunks so running state stays
    #      in vregs; bf16 scratch is read twice (max+picked, then deferred exp-sum).
    loss_acc = jnp.zeros((8, W), jnp.float32)
    cnt_acc = jnp.zeros((8, W), jnp.float32)
    for r in range(tile_h // 8):
        r0, r1 = r * 8, (r + 1) * 8
        t_c = t_ref[0, r0:r1, :]                                      # (8, W) int32
        m_c = jnp.full((8, W), -jnp.inf, jnp.float32)
        p_c = jnp.zeros((8, W), jnp.float32)
        for c in range(C):                                            # pass 1: max + picked
            lc = l_ref[c, r0:r1, :].astype(jnp.float32)
            m_c = jnp.maximum(m_c, lc)
            p_c = jnp.where(t_c == c, lc, p_c)
        s_c = jnp.zeros((8, W), jnp.float32)
        for c in range(C):                                            # pass 2: deferred exp-sum
            s_c = s_c + jnp.exp(l_ref[c, r0:r1, :].astype(jnp.float32) - m_c)
        lse_c = jnp.log(s_c) + m_c
        valid = t_c != IGNORE_INDEX
        loss_acc = loss_acc + jnp.where(valid, lse_c - p_c, 0.0)
        cnt_acc = cnt_acc + valid.astype(jnp.float32)

    # Per-lane partials only; no in-kernel cross-lane (XLU) reduction.
    loss_ref[...] = loss_acc
    cnt_ref[...] = cnt_acc


@jax.jit
def criterion_all(preds, target):
    """Equivalent of CriterionAll(loss_type='softmax').forward(preds, target)."""
    N, C, hp, wp = preds.shape
    _, H, W = target.shape

    # Pad W to a lane-dense multiple of 128 and H to a multiple of the tile (odd sizes
    # like 473 stay cheap); padded target pixels are IGNORE_INDEX so they contribute 0.
    W_pad = _round_up(W, 128)
    if H >= 64:
        tile_h = 64                      # VMEM-friendly on v7x even for large C, deep grid
        H_pad = _round_up(H, 64)
    else:
        H_pad = _round_up(H, 16)         # >=16 rows keeps bf16 sublane packing happy
        tile_h = H_pad
    ht = H_pad // tile_h

    ah_np = np.zeros((H_pad, hp), np.float32)
    ah_np[:H] = _interp_matrix(H, hp)
    awt_np = np.zeros((wp, W_pad), np.float32)
    awt_np[:, :W] = _interp_matrix(W, wp).T
    ah = jnp.asarray(ah_np, jnp.bfloat16)        # (H_pad, hp)
    awt = jnp.asarray(awt_np, jnp.bfloat16)      # (wp, W_pad)

    # Free view of NCHW (no transpose); bf16 halves HBM traffic into the kernel.
    preds_k = preds.reshape(N, C * hp, wp).astype(jnp.bfloat16)
    target_p = jnp.pad(target.astype(jnp.int32),
                       ((0, 0), (0, H_pad - H), (0, W_pad - W)),
                       constant_values=IGNORE_INDEX)

    kernel = functools.partial(_ce_kernel, C=C, hp=hp, tile_h=tile_h)

    loss_parts, cnt_parts = pl.pallas_call(
        kernel,
        out_shape=(jax.ShapeDtypeStruct((N * 8, ht * W_pad), jnp.float32),
                   jax.ShapeDtypeStruct((N * 8, ht * W_pad), jnp.float32)),
        grid_spec=pltpu.PrefetchScalarGridSpec(
            num_scalar_prefetch=0,
            grid=(N, ht),                                 # h innermost: preds block + z scratch stay resident per sample
            in_specs=[
                pl.BlockSpec((1, C * hp, wp), lambda n, h: (n, 0, 0)),   # resident over h
                pl.BlockSpec((1, tile_h, W_pad), lambda n, h: (n, h, 0)),
                pl.BlockSpec((tile_h, hp), lambda n, h: (h, 0)),
                pl.BlockSpec((wp, W_pad), lambda n, h: (0, 0)),
            ],
            out_specs=[
                pl.BlockSpec((8, W_pad), lambda n, h: (n, h)),
                pl.BlockSpec((8, W_pad), lambda n, h: (n, h)),
            ],
            scratch_shapes=[
                pltpu.VMEM((C, hp, W_pad), jnp.bfloat16),      # W-interpolated logits (per sample)
                pltpu.VMEM((C, tile_h, W_pad), jnp.bfloat16),  # upsampled logits slab (per tile)
            ],
        ),
        compiler_params=pltpu.CompilerParams(
            # h carries the per-sample W-interp scratch -> must be sequential ("arbitrary");
            # n is "parallel" so v7x's two TensorCores split the batch.
            dimension_semantics=("parallel", "arbitrary"),
            vmem_limit_bytes=64 * 1024 * 1024,   # explicit budget; <= v7x physical VMEM
        ),
    )(preds_k, target_p, ah, awt)

    loss_sum = jnp.sum(loss_parts)
    cnt_sum = jnp.sum(cnt_parts)
    # CrossEntropyLoss(reduction='mean', ignore_index=255): sum over valid / #valid.
    # (Matches PyTorch: NaN if every pixel is ignore_index.)
    return loss_sum / cnt_sum


def _reference(preds, target):
    """Plain-JAX f32 reference of the PyTorch forward."""
    N, C, hp, wp = preds.shape
    _, H, W = target.shape
    Ah = jnp.asarray(_interp_matrix(H, hp))
    Aw = jnp.asarray(_interp_matrix(W, wp))
    up = jnp.einsum('Hh,nchw,Ww->ncHW', Ah, preds, Aw)
    logp = jax.nn.log_softmax(up, axis=1)
    valid = target != IGNORE_INDEX
    safe_t = jnp.where(valid, target, 0)
    picked = jnp.take_along_axis(logp, safe_t[:, None].astype(jnp.int32), axis=1)[:, 0]
    loss = -jnp.where(valid, picked, 0.0)
    return jnp.sum(loss) / jnp.sum(valid)


if __name__ == "__main__":
    key = jax.random.PRNGKey(0)
    k1, k2, k3 = jax.random.split(key, 3)

    N, C, hp, wp = 2, 4, 8, 8       # prediction logits at low resolution
    H, W = 16, 16                   # target resolution (bilinear upsample 8->16)

    preds = jax.random.normal(k1, (N, C, hp, wp), dtype=jnp.float32)
    target = jax.random.randint(k2, (N, H, W), 0, C, dtype=jnp.int32)
    ignore_mask = jax.random.uniform(k3, (N, H, W)) < 0.1
    target = jnp.where(ignore_mask, IGNORE_INDEX, target)

    loss = criterion_all(preds, target)
    jax.block_until_ready(loss)
    assert jnp.isfinite(loss)

    ref = _reference(preds, target)
    assert jnp.allclose(loss, ref, rtol=5e-2, atol=5e-2), (loss, ref)

    print("KERNEL_OK")
</pallas_src>

<mosaic_0001>
module attributes {stable_mosaic.version = 11 : i64} {
  func.func @_ce_kernel(%arg0: i32, %arg1: i32, %arg2: memref<1x32x8xbf16, #tpu.memory_space<vmem>>, %arg3: memref<1x16x128xi32, #tpu.memory_space<vmem>>, %arg4: memref<16x8xbf16, #tpu.memory_space<vmem>>, %arg5: memref<8x128xbf16, #tpu.memory_space<vmem>>, %arg6: memref<8x128xf32, #tpu.memory_space<vmem>>, %arg7: memref<8x128xf32, #tpu.memory_space<vmem>>, %arg8: memref<4x8x128xbf16, #tpu.memory_space<vmem>>, %arg9: memref<4x16x128xbf16, #tpu.memory_space<vmem>>) attributes {dimension_semantics = [#tpu.dimension_semantics<parallel>, #tpu.dimension_semantics<arbitrary>], iteration_bounds = array<i64: 2, 1>, scalar_prefetch = 0 : i64, scratch_operands = 2 : i64, tpu.core_type = #tpu.core_type<tc>, window_params = [{transform_indices = @transform_0, window_bounds = array<i64: 1, 32, 8>}, {transform_indices = @transform_1, window_bounds = array<i64: 1, 16, 128>}, {transform_indices = @transform_2, window_bounds = array<i64: 16, 8>}, {pipeline_mode = #tpu.pipeline_mode<synchronous>, transform_indices = @transform_3, window_bounds = array<i64: 8, 128>}, {transform_indices = @transform_4, window_bounds = array<i64: 8, 128>}, {transform_indices = @transform_5, window_bounds = array<i64: 8, 128>}]} {
    %c0_i32 = arith.constant 0 : i32
    %0 = arith.cmpi eq, %arg1, %c0_i32 : i32
    %1 = arith.extui %0 : i1 to i32
    %c0_i32_0 = arith.constant 0 : i32
    %2 = arith.cmpi ne, %1, %c0_i32_0 : i32
    scf.if %2 {
      %c0_99 = arith.constant 0 : index
      %c0_100 = arith.constant 0 : index
      %172 = vector.load %arg5[%c0_99, %c0_100] : memref<8x128xbf16, #tpu.memory_space<vmem>>, vector<8x128xbf16>
      %c0_101 = arith.constant 0 : index
      %c0_102 = arith.constant 0 : index
      %c0_103 = arith.constant 0 : index
      %173 = vector.load %arg2[%c0_101, %c0_102, %c0_103] : memref<1x32x8xbf16, #tpu.memory_space<vmem>>, vector<1x8x8xbf16>
      %174 = vector.shape_cast %173 : vector<1x8x8xbf16> to vector<8x8xbf16>
      %cst_104 = arith.constant dense<0.000000e+00> : vector<8x128xf32>
      %175 = tpu.matmul %174, %172, %cst_104 {dimension_numbers = #tpu.dot_dimension_numbers<[1], [0], [0], [1], [0, 0, 1, 1], [], []>} : vector<8x8xbf16>, vector<8x128xbf16>, vector<8x128xf32> -> vector<8x128xf32>
      %176 = arith.truncf %175 : vector<8x128xf32> to vector<8x128xbf16>
      %c0_105 = arith.constant 0 : index
      %c0_106 = arith.constant 0 : index
      %c0_107 = arith.constant 0 : index
      %177 = vector.load %arg8[%c0_105, %c0_106, %c0_107] : memref<4x8x128xbf16, #tpu.memory_space<vmem>>, vector<1x8x128xbf16>
      %178 = vector.shape_cast %177 : vector<1x8x128xbf16> to vector<8x128xbf16>
      %179 = vector.shape_cast %176 : vector<8x128xbf16> to vector<1x8x128xbf16>
      tpu.vector_store %arg8[%c0_105, %c0_106, %c0_107], %179 {strides = array<i32>} : memref<4x8x128xbf16, #tpu.memory_space<vmem>>, vector<1x8x128xbf16>,
      %c0_108 = arith.constant 0 : index
      %c8_109 = arith.constant 8 : index
      %c0_110 = arith.constant 0 : index
      %180 = vector.load %arg2[%c0_108, %c8_109, %c0_110] : memref<1x32x8xbf16, #tpu.memory_space<vmem>>, vector<1x8x8xbf16>
      %181 = vector.shape_cast %180 : vector<1x8x8xbf16> to vector<8x8xbf16>
      %cst_111 = arith.constant dense<0.000000e+00> : vector<8x128xf32>
      %182 = tpu.matmul %181, %172, %cst_111 {dimension_numbers = #tpu.dot_dimension_numbers<[1], [0], [0], [1], [0, 0, 1, 1], [], []>} : vector<8x8xbf16>, vector<8x128xbf16>, vector<8x128xf32> -> vector<8x128xf32>
      %183 = arith.truncf %182 : vector<8x128xf32> to vector<8x128xbf16>
      %c1_112 = arith.constant 1 : index
      %c0_113 = arith.constant 0 : index
      %c0_114 = arith.constant 0 : index
      %184 = vector.load %arg8[%c1_112, %c0_113, %c0_114] : memref<4x8x128xbf16, #tpu.memory_space<vmem>>, vector<1x8x128xbf16>
      %185 = vector.shape_cast %184 : vector<1x8x128xbf16> to vector<8x128xbf16>
      %186 = vector.shape_cast %183 : vector<8x128xbf16> to vector<1x8x128xbf16>
      tpu.vector_store %arg8[%c1_112, %c0_113, %c0_114], %186 {strides = array<i32>} : memref<4x8x128xbf16, #tpu.memory_space<vmem>>, vector<1x8x128xbf16>,
      %c0_115 = arith.constant 0 : index
      %c16 = arith.constant 16 : index
      %c0_116 = arith.constant 0 : index
      %187 = vector.load %arg2[%c0_115, %c16, %c0_116] : memref<1x32x8xbf16, #tpu.memory_space<vmem>>, vector<1x8x8xbf16>
      %188 = vector.shape_cast %187 : vector<1x8x8xbf16> to vector<8x8xbf16>
      %cst_117 = arith.constant dense<0.000000e+00> : vector<8x128xf32>
      %189 = tpu.matmul %188, %172, %cst_117 {dimension_numbers = #tpu.dot_dimension_numbers<[1], [0], [0], [1], [0, 0, 1, 1], [], []>} : vector<8x8xbf16>, vector<8x128xbf16>, vector<8x128xf32> -> vector<8x128xf32>
      %190 = arith.truncf %189 : vector<8x128xf32> to vector<8x128xbf16>
      %c2_118 = arith.constant 2 : index
      %c0_119 = arith.constant 0 : index
      %c0_120 = arith.constant 0 : index
      %191 = vector.load %arg8[%c2_118, %c0_119, %c0_120] : memref<4x8x128xbf16, #tpu.memory_space<vmem>>, vector<1x8x128xbf16>
      %192 = vector.shape_cast %191 : vector<1x8x128xbf16> to vector<8x128xbf16>
      %193 = vector.shape_cast %190 : vector<8x128xbf16> to vector<1x8x128xbf16>
      tpu.vector_store %arg8[%c2_118, %c0_119, %c0_120], %193 {strides = array<i32>} : memref<4x8x128xbf16, #tpu.memory_space<vmem>>, vector<1x8x128xbf16>,
      %c0_121 = arith.constant 0 : index
      %c24 = arith.constant 24 : index
      %c0_122 = arith.constant 0 : index
      %194 = vector.load %arg2[%c0_121, %c24, %c0_122] : memref<1x32x8xbf16, #tpu.memory_space<vmem>>, vector<1x8x8xbf16>
      %195 = vector.shape_cast %194 : vector<1x8x8xbf16> to vector<8x8xbf16>
      %cst_123 = arith.constant dense<0.000000e+00> : vector<8x128xf32>
      %196 = tpu.matmul %195, %172, %cst_123 {dimension_numbers = #tpu.dot_dimension_numbers<[1], [0], [0], [1], [0, 0, 1, 1], [], []>} : vector<8x8xbf16>, vector<8x128xbf16>, vector<8x128xf32> -> vector<8x128xf32>
      %197 = arith.truncf %196 : vector<8x128xf32> to vector<8x128xbf16>
      %c3_124 = arith.constant 3 : index
      %c0_125 = arith.constant 0 : index
      %c0_126 = arith.constant 0 : index
      %198 = vector.load %arg8[%c3_124, %c0_125, %c0_126] : memref<4x8x128xbf16, #tpu.memory_space<vmem>>, vector<1x8x128xbf16>
      %199 = vector.shape_cast %198 : vector<1x8x128xbf16> to vector<8x128xbf16>
      %200 = vector.shape_cast %197 : vector<8x128xbf16> to vector<1x8x128xbf16>
      tpu.vector_store %arg8[%c3_124, %c0_125, %c0_126], %200 {strides = array<i32>} : memref<4x8x128xbf16, #tpu.memory_space<vmem>>, vector<1x8x128xbf16>,
    } else {
    }
    %c0 = arith.constant 0 : index
    %c0_1 = arith.constant 0 : index
    %3 = vector.load %arg4[%c0, %c0_1] : memref<16x8xbf16, #tpu.memory_space<vmem>>, vector<16x8xbf16>
    %c0_2 = arith.constant 0 : index
    %c0_3 = arith.constant 0 : index
    %c0_4 = arith.constant 0 : index
    %4 = vector.load %arg8[%c0_2, %c0_3, %c0_4] : memref<4x8x128xbf16, #tpu.memory_space<vmem>>, vector<1x8x128xbf16>
    %5 = vector.shape_cast %4 : vector<1x8x128xbf16> to vector<8x128xbf16>
    %cst = arith.constant dense<0.000000e+00> : vector<16x128xf32>
    %6 = tpu.matmul %3, %5, %cst {dimension_numbers = #tpu.dot_dimension_numbers<[1], [0], [0], [1], [0, 0, 1, 1], [], []>} : vector<16x8xbf16>, vector<8x128xbf16>, vector<16x128xf32> -> vector<16x128xf32>
    %7 = arith.truncf %6 : vector<16x128xf32> to vector<16x128xbf16>
    %c0_5 = arith.constant 0 : index
    %c0_6 = arith.constant 0 : index
    %c0_7 = arith.constant 0 : index
    %8 = vector.load %arg9[%c0_5, %c0_6, %c0_7] : memref<4x16x128xbf16, #tpu.memory_space<vmem>>, vector<1x16x128xbf16>
    %9 = vector.shape_cast %8 : vector<1x16x128xbf16> to vector<16x128xbf16>
    %10 = vector.shape_cast %7 : vector<16x128xbf16> to vector<1x16x128xbf16>
    tpu.vector_store %arg9[%c0_5, %c0_6, %c0_7], %10 {strides = array<i32>} : memref<4x16x128xbf16, #tpu.memory_space<vmem>>, vector<1x16x128xbf16>,
    %c1 = arith.constant 1 : index
    %c0_8 = arith.constant 0 : index
    %c0_9 = arith.constant 0 : index
    %11 = vector.load %arg8[%c1, %c0_8, %c0_9] : memref<4x8x128xbf16, #tpu.memory_space<vmem>>, vector<1x8x128xbf16>
    %12 = vector.shape_cast %11 : vector<1x8x128xbf16> to vector<8x128xbf16>
    %cst_10 = arith.constant dense<0.000000e+00> : vector<16x128xf32>
    %13 = tpu.matmul %3, %12, %cst_10 {dimension_numbers = #tpu.dot_dimension_numbers<[1], [0], [0], [1], [0, 0, 1, 1], [], []>} : vector<16x8xbf16>, vector<8x128xbf16>, vector<16x128xf32> -> vector<16x128xf32>
    %14 = arith.truncf %13 : vector<16x128xf32> to vector<16x128xbf16>
    %c1_11 = arith.constant 1 : index
    %c0_12 = arith.constant 0 : index
    %c0_13 = arith.constant 0 : index
    %15 = vector.load %arg9[%c1_11, %c0_12, %c0_13] : memref<4x16x128xbf16, #tpu.memory_space<vmem>>, vector<1x16x128xbf16>
    %16 = vector.shape_cast %15 : vector<1x16x128xbf16> to vector<16x128xbf16>
    %17 = vector.shape_cast %14 : vector<16x128xbf16> to vector<1x16x128xbf16>
    tpu.vector_store %arg9[%c1_11, %c0_12, %c0_13], %17 {strides = array<i32>} : memref<4x16x128xbf16, #tpu.memory_space<vmem>>, vector<1x16x128xbf16>,
    %c2 = arith.constant 2 : index
    %c0_14 = arith.constant 0 : index
    %c0_15 = arith.constant 0 : index
    %18 = vector.load %arg8[%c2, %c0_14, %c0_15] : memref<4x8x128xbf16, #tpu.memory_space<vmem>>, vector<1x8x128xbf16>
    %19 = vector.shape_cast %18 : vector<1x8x128xbf16> to vector<8x128xbf16>
    %cst_16 = arith.constant dense<0.000000e+00> : vector<16x128xf32>
    %20 = tpu.matmul %3, %19, %cst_16 {dimension_numbers = #tpu.dot_dimension_numbers<[1], [0], [0], [1], [0, 0, 1, 1], [], []>} : vector<16x8xbf16>, vector<8x128xbf16>, vector<16x128xf32> -> vector<16x128xf32>
    %21 = arith.truncf %20 : vector<16x128xf32> to vector<16x128xbf16>
    %c2_17 = arith.constant 2 : index
    %c0_18 = arith.constant 0 : index
    %c0_19 = arith.constant 0 : index
    %22 = vector.load %arg9[%c2_17, %c0_18, %c0_19] : memref<4x16x128xbf16, #tpu.memory_space<vmem>>, vector<1x16x128xbf16>
    %23 = vector.shape_cast %22 : vector<1x16x128xbf16> to vector<16x128xbf16>
    %24 = vector.shape_cast %21 : vector<16x128xbf16> to vector<1x16x128xbf16>
    tpu.vector_store %arg9[%c2_17, %c0_18, %c0_19], %24 {strides = array<i32>} : memref<4x16x128xbf16, #tpu.memory_space<vmem>>, vector<1x16x128xbf16>,
    %c3 = arith.constant 3 : index
    %c0_20 = arith.constant 0 : index
    %c0_21 = arith.constant 0 : index
    %25 = vector.load %arg8[%c3, %c0_20, %c0_21] : memref<4x8x128xbf16, #tpu.memory_space<vmem>>, vector<1x8x128xbf16>
    %26 = vector.shape_cast %25 : vector<1x8x128xbf16> to vector<8x128xbf16>
    %cst_22 = arith.constant dense<0.000000e+00> : vector<16x128xf32>
    %27 = tpu.matmul %3, %26, %cst_22 {dimension_numbers = #tpu.dot_dimension_numbers<[1], [0], [0], [1], [0, 0, 1, 1], [], []>} : vector<16x8xbf16>, vector<8x128xbf16>, vector<16x128xf32> -> vector<16x128xf32>
    %28 = arith.truncf %27 : vector<16x128xf32> to vector<16x128xbf16>
    %c3_23 = arith.constant 3 : index
    %c0_24 = arith.constant 0 : index
    %c0_25 = arith.constant 0 : index
    %29 = vector.load %arg9[%c3_23, %c0_24, %c0_25] : memref<4x16x128xbf16, #tpu.memory_space<vmem>>, vector<1x16x128xbf16>
    %30 = vector.shape_cast %29 : vector<1x16x128xbf16> to vector<16x128xbf16>
    %31 = vector.shape_cast %28 : vector<16x128xbf16> to vector<1x16x128xbf16>
    tpu.vector_store %arg9[%c3_23, %c0_24, %c0_25], %31 {strides = array<i32>} : memref<4x16x128xbf16, #tpu.memory_space<vmem>>, vector<1x16x128xbf16>,
    %cst_26 = arith.constant 0.000000e+00 : f32
    %32 = vector.broadcast %cst_26 : f32 to vector<8x128xf32>
    %cst_27 = arith.constant 0.000000e+00 : f32
    %33 = vector.broadcast %cst_27 : f32 to vector<8x128xf32>
    %c0_28 = arith.constant 0 : index
    %c0_29 = arith.constant 0 : index
    %c0_30 = arith.constant 0 : index
    %34 = vector.load %arg3[%c0_28, %c0_29, %c0_30] : memref<1x16x128xi32, #tpu.memory_space<vmem>>, vector<1x8x128xi32>
    %35 = vector.shape_cast %34 : vector<1x8x128xi32> to vector<8x128xi32>
    %cst_31 = arith.constant 0xFF800000 : f32
    %36 = vector.broadcast %cst_31 : f32 to vector<8x128xf32>
    %cst_32 = arith.constant 0.000000e+00 : f32
    %37 = vector.broadcast %cst_32 : f32 to vector<8x128xf32>
    %c0_33 = arith.constant 0 : index
    %c0_34 = arith.constant 0 : index
    %c0_35 = arith.constant 0 : index
    %38 = vector.load %arg9[%c0_33, %c0_34, %c0_35] : memref<4x16x128xbf16, #tpu.memory_space<vmem>>, vector<1x8x128xbf16>
    %39 = vector.shape_cast %38 : vector<1x8x128xbf16> to vector<8x128xbf16>
    %40 = arith.extf %39 : vector<8x128xbf16> to vector<8x128xf32>
    %41 = arith.maximumf %36, %40 : vector<8x128xf32>
    %c0_i32_36 = arith.constant 0 : i32
    %42 = vector.broadcast %c0_i32_36 : i32 to vector<8x128xi32>
    %43 = arith.cmpi eq, %35, %42 : vector<8x128xi32>
    %44 = arith.select %43, %40, %37 : vector<8x128xi1>, vector<8x128xf32>
    %c1_37 = arith.constant 1 : index
    %c0_38 = arith.constant 0 : index
    %c0_39 = arith.constant 0 : index
    %45 = vector.load %arg9[%c1_37, %c0_38, %c0_39] : memref<4x16x128xbf16, #tpu.memory_space<vmem>>, vector<1x8x128xbf16>
    %46 = vector.shape_cast %45 : vector<1x8x128xbf16> to vector<8x128xbf16>
    %47 = arith.extf %46 : vector<8x128xbf16> to vector<8x128xf32>
    %48 = arith.maximumf %41, %47 : vector<8x128xf32>
    %c1_i32 = arith.constant 1 : i32
    %49 = vector.broadcast %c1_i32 : i32 to vector<8x128xi32>
    %50 = arith.cmpi eq, %35, %49 : vector<8x128xi32>
    %51 = arith.select %50, %47, %44 : vector<8x128xi1>, vector<8x128xf32>
    %c2_40 = arith.constant 2 : index
    %c0_41 = arith.constant 0 : index
    %c0_42 = arith.constant 0 : index
    %52 = vector.load %arg9[%c2_40, %c0_41, %c0_42] : memref<4x16x128xbf16, #tpu.memory_space<vmem>>, vector<1x8x128xbf16>
    %53 = vector.shape_cast %52 : vector<1x8x128xbf16> to vector<8x128xbf16>
    %54 = arith.extf %53 : vector<8x128xbf16> to vector<8x128xf32>
    %55 = arith.maximumf %48, %54 : vector<8x128xf32>
    %c2_i32 = arith.constant 2 : i32
    %56 = vector.broadcast %c2_i32 : i32 to vector<8x128xi32>
    %57 = arith.cmpi eq, %35, %56 : vector<8x128xi32>
    %58 = arith.select %57, %54, %51 : vector<8x128xi1>, vector<8x128xf32>
    %c3_43 = arith.constant 3 : index
    %c0_44 = arith.constant 0 : index
    %c0_45 = arith.constant 0 : index
    %59 = vector.load %arg9[%c3_43, %c0_44, %c0_45] : memref<4x16x128xbf16, #tpu.memory_space<vmem>>, vector<1x8x128xbf16>
    %60 = vector.shape_cast %59 : vector<1x8x128xbf16> to vector<8x128xbf16>
    %61 = arith.extf %60 : vector<8x128xbf16> to vector<8x128xf32>
    %62 = arith.maximumf %55, %61 : vector<8x128xf32>
    %c3_i32 = arith.constant 3 : i32
    %63 = vector.broadcast %c3_i32 : i32 to vector<8x128xi32>
    %64 = arith.cmpi eq, %35, %63 : vector<8x128xi32>
    %65 = arith.select %64, %61, %58 : vector<8x128xi1>, vector<8x128xf32>
    %cst_46 = arith.constant 0.000000e+00 : f32
    %66 = vector.broadcast %cst_46 : f32 to vector<8x128xf32>
    %c0_47 = arith.constant 0 : index
    %c0_48 = arith.constant 0 : index
    %c0_49 = arith.constant 0 : index
    %67 = vector.load %arg9[%c0_47, %c0_48, %c0_49] : memref<4x16x128xbf16, #tpu.memory_space<vmem>>, vector<1x8x128xbf16>
    %68 = vector.shape_cast %67 : vector<1x8x128xbf16> to vector<8x128xbf16>
    %69 = arith.extf %68 : vector<8x128xbf16> to vector<8x128xf32>
    %70 = arith.subf %69, %62 : vector<8x128xf32>
    %71 = math.exp %70 : vector<8x128xf32>
    %72 = arith.addf %66, %71 : vector<8x128xf32>
    %c1_50 = arith.constant 1 : index
    %c0_51 = arith.constant 0 : index
    %c0_52 = arith.constant 0 : index
    %73 = vector.load %arg9[%c1_50, %c0_51, %c0_52] : memref<4x16x128xbf16, #tpu.memory_space<vmem>>, vector<1x8x128xbf16>
    %74 = vector.shape_cast %73 : vector<1x8x128xbf16> to vector<8x128xbf16>
    %75 = arith.extf %74 : vector<8x128xbf16> to vector<8x128xf32>
    %76 = arith.subf %75, %62 : vector<8x128xf32>
    %77 = math.exp %76 : vector<8x128xf32>
    %78 = arith.addf %72, %77 : vector<8x128xf32>
    %c2_53 = arith.constant 2 : index
    %c0_54 = arith.constant 0 : index
    %c0_55 = arith.constant 0 : index
    %79 = vector.load %arg9[%c2_53, %c0_54, %c0_55] : memref<4x16x128xbf16, #tpu.memory_space<vmem>>, vector<1x8x128xbf16>
    %80 = vector.shape_cast %79 : vector<1x8x128xbf16> to vector<8x128xbf16>
    %81 = arith.extf %80 : vector<8x128xbf16> to vector<8x128xf32>
    %82 = arith.subf %81, %62 : vector<8x128xf32>
    %83 = math.exp %82 : vector<8x128xf32>
    %84 = arith.addf %78, %83 : vector<8x128xf32>
    %c3_56 = arith.constant 3 : index
    %c0_57 = arith.constant 0 : index
    %c0_58 = arith.constant 0 : index
    %85 = vector.load %arg9[%c3_56, %c0_57, %c0_58] : memref<4x16x128xbf16, #tpu.memory_space<vmem>>, vector<1x8x128xbf16>
    %86 = vector.shape_cast %85 : vector<1x8x128xbf16> to vector<8x128xbf16>
    %87 = arith.extf %86 : vector<8x128xbf16> to vector<8x128xf32>
    %88 = arith.subf %87, %62 : vector<8x128xf32>
    %89 = math.exp %88 : vector<8x128xf32>
    %90 = arith.addf %84, %89 : vector<8x128xf32>
    %91 = math.log %90 : vector<8x128xf32>
    %92 = arith.addf %91, %62 : vector<8x128xf32>
    %c255_i32 = arith.constant 255 : i32
    %93 = vector.broadcast %c255_i32 : i32 to vector<8x128xi32>
    %94 = arith.cmpi ne, %35, %93 : vector<8x128xi32>
    %95 = arith.subf %92, %65 : vector<8x128xf32>
    %cst_59 = arith.constant 0.000000e+00 : f32
    %96 = vector.broadcast %cst_59 : f32 to vector<8x128xf32>
    %97 = arith.select %94, %95, %96 : vector<8x128xi1>, vector<8x128xf32>
    %98 = arith.addf %32, %97 : vector<8x128xf32>
    %99 = arith.extui %94 : vector<8x128xi1> to vector<8x128xi32>
    %100 = arith.sitofp %99 : vector<8x128xi32> to vector<8x128xf32>
    %101 = arith.addf %33, %100 : vector<8x128xf32>
    %c0_60 = arith.constant 0 : index
    %c8 = arith.constant 8 : index
    %c0_61 = arith.constant 0 : index
    %102 = vector.load %arg3[%c0_60, %c8, %c0_61] : memref<1x16x128xi32, #tpu.memory_space<vmem>>, vector<1x8x128xi32>
    %103 = vector.shape_cast %102 : vector<1x8x128xi32> to vector<8x128xi32>
    %cst_62 = arith.constant 0xFF800000 : f32
    %104 = vector.broadcast %cst_62 : f32 to vector<8x128xf32>
    %cst_63 = arith.constant 0.000000e+00 : f32
    %105 = vector.broadcast %cst_63 : f32 to vector<8x128xf32>
    %c0_64 = arith.constant 0 : index
    %c8_65 = arith.constant 8 : index
    %c0_66 = arith.constant 0 : index
    %106 = vector.load %arg9[%c0_64, %c8_65, %c0_66] : memref<4x16x128xbf16, #tpu.memory_space<vmem>>, vector<1x8x128xbf16>
    %107 = vector.shape_cast %106 : vector<1x8x128xbf16> to vector<8x128xbf16>
    %108 = arith.extf %107 : vector<8x128xbf16> to vector<8x128xf32>
    %109 = arith.maximumf %104, %108 : vector<8x128xf32>
    %c0_i32_67 = arith.constant 0 : i32
    %110 = vector.broadcast %c0_i32_67 : i32 to vector<8x128xi32>
    %111 = arith.cmpi eq, %103, %110 : vector<8x128xi32>
    %112 = arith.select %111, %108, %105 : vector<8x128xi1>, vector<8x128xf32>
    %c1_68 = arith.constant 1 : index
    %c8_69 = arith.constant 8 : index
    %c0_70 = arith.constant 0 : index
    %113 = vector.load %arg9[%c1_68, %c8_69, %c0_70] : memref<4x16x128xbf16, #tpu.memory_space<vmem>>, vector<1x8x128xbf16>
    %114 = vector.shape_cast %113 : vector<1x8x128xbf16> to vector<8x128xbf16>
    %115 = arith.extf %114 : vector<8x128xbf16> to vector<8x128xf32>
    %116 = arith.maximumf %109, %115 : vector<8x128xf32>
    %c1_i32_71 = arith.constant 1 : i32
    %117 = vector.broadcast %c1_i32_71 : i32 to vector<8x128xi32>
    %118 = arith.cmpi eq, %103, %117 : vector<8x128xi32>
    %119 = arith.select %118, %115, %112 : vector<8x128xi1>, vector<8x128xf32>
    %c2_72 = arith.constant 2 : index
    %c8_73 = arith.constant 8 : index
    %c0_74 = arith.constant 0 : index
    %120 = vector.load %arg9[%c2_72, %c8_73, %c0_74] : memref<4x16x128xbf16, #tpu.memory_space<vmem>>, vector<1x8x128xbf16>
    %121 = vector.shape_cast %120 : vector<1x8x128xbf16> to vector<8x128xbf16>
    %122 = arith.extf %121 : vector<8x128xbf16> to vector<8x128xf32>
    %123 = arith.maximumf %116, %122 : vector<8x128xf32>
    %c2_i32_75 = arith.constant 2 : i32
    %124 = vector.broadcast %c2_i32_75 : i32 to vector<8x128xi32>
    %125 = arith.cmpi eq, %103, %124 : vector<8x128xi32>
    %126 = arith.select %125, %122, %119 : vector<8x128xi1>, vector<8x128xf32>
    %c3_76 = arith.constant 3 : index
    %c8_77 = arith.constant 8 : index
    %c0_78 = arith.constant 0 : index
    %127 = vector.load %arg9[%c3_76, %c8_77, %c0_78] : memref<4x16x128xbf16, #tpu.memory_space<vmem>>, vector<1x8x128xbf16>
    %128 = vector.shape_cast %127 : vector<1x8x128xbf16> to vector<8x128xbf16>
    %129 = arith.extf %128 : vector<8x128xbf16> to vector<8x128xf32>
    %130 = arith.maximumf %123, %129 : vector<8x128xf32>
    %c3_i32_79 = arith.constant 3 : i32
    %131 = vector.broadcast %c3_i32_79 : i32 to vector<8x128xi32>
    %132 = arith.cmpi eq, %103, %131 : vector<8x128xi32>
    %133 = arith.select %132, %129, %126 : vector<8x128xi1>, vector<8x128xf32>
    %cst_80 = arith.constant 0.000000e+00 : f32
    %134 = vector.broadcast %cst_80 : f32 to vector<8x128xf32>
    %c0_81 = arith.constant 0 : index
    %c8_82 = arith.constant 8 : index
    %c0_83 = arith.constant 0 : index
    %135 = vector.load %arg9[%c0_81, %c8_82, %c0_83] : memref<4x16x128xbf16, #tpu.memory_space<vmem>>, vector<1x8x128xbf16>
    %136 = vector.shape_cast %135 : vector<1x8x128xbf16> to vector<8x128xbf16>
    %137 = arith.extf %136 : vector<8x128xbf16> to vector<8x128xf32>
    %138 = arith.subf %137, %130 : vector<8x128xf32>
    %139 = math.exp %138 : vector<8x128xf32>
    %140 = arith.addf %134, %139 : vector<8x128xf32>
    %c1_84 = arith.constant 1 : index
    %c8_85 = arith.constant 8 : index
    %c0_86 = arith.constant 0 : index
    %141 = vector.load %arg9[%c1_84, %c8_85, %c0_86] : memref<4x16x128xbf16, #tpu.memory_space<vmem>>, vector<1x8x128xbf16>
    %142 = vector.shape_cast %141 : vector<1x8x128xbf16> to vector<8x128xbf16>
    %143 = arith.extf %142 : vector<8x128xbf16> to vector<8x128xf32>
    %144 = arith.subf %143, %130 : vector<8x128xf32>
    %145 = math.exp %144 : vector<8x128xf32>
    %146 = arith.addf %140, %145 : vector<8x128xf32>
    %c2_87 = arith.constant 2 : index
    %c8_88 = arith.constant 8 : index
    %c0_89 = arith.constant 0 : index
    %147 = vector.load %arg9[%c2_87, %c8_88, %c0_89] : memref<4x16x128xbf16, #tpu.memory_space<vmem>>, vector<1x8x128xbf16>
    %148 = vector.shape_cast %147 : vector<1x8x128xbf16> to vector<8x128xbf16>
    %149 = arith.extf %148 : vector<8x128xbf16> to vector<8x128xf32>
    %150 = arith.subf %149, %130 : vector<8x128xf32>
    %151 = math.exp %150 : vector<8x128xf32>
    %152 = arith.addf %146, %151 : vector<8x128xf32>
    %c3_90 = arith.constant 3 : index
    %c8_91 = arith.constant 8 : index
    %c0_92 = arith.constant 0 : index
    %153 = vector.load %arg9[%c3_90, %c8_91, %c0_92] : memref<4x16x128xbf16, #tpu.memory_space<vmem>>, vector<1x8x128xbf16>
    %154 = vector.shape_cast %153 : vector<1x8x128xbf16> to vector<8x128xbf16>
    %155 = arith.extf %154 : vector<8x128xbf16> to vector<8x128xf32>
    %156 = arith.subf %155, %130 : vector<8x128xf32>
    %157 = math.exp %156 : vector<8x128xf32>
    %158 = arith.addf %152, %157 : vector<8x128xf32>
    %159 = math.log %158 : vector<8x128xf32>
    %160 = arith.addf %159, %130 : vector<8x128xf32>
    %c255_i32_93 = arith.constant 255 : i32
    %161 = vector.broadcast %c255_i32_93 : i32 to vector<8x128xi32>
    %162 = arith.cmpi ne, %103, %161 : vector<8x128xi32>
    %163 = arith.subf %160, %133 : vector<8x128xf32>
    %cst_94 = arith.constant 0.000000e+00 : f32
    %164 = vector.broadcast %cst_94 : f32 to vector<8x128xf32>
    %165 = arith.select %162, %163, %164 : vector<8x128xi1>, vector<8x128xf32>
    %166 = arith.addf %98, %165 : vector<8x128xf32>
    %167 = arith.extui %162 : vector<8x128xi1> to vector<8x128xi32>
    %168 = arith.sitofp %167 : vector<8x128xi32> to vector<8x128xf32>
    %169 = arith.addf %101, %168 : vector<8x128xf32>
    %c0_95 = arith.constant 0 : index
    %c0_96 = arith.constant 0 : index
    %170 = vector.load %arg6[%c0_95, %c0_96] : memref<8x128xf32, #tpu.memory_space<vmem>>, vector<8x128xf32>
    tpu.vector_store %arg6[%c0_95, %c0_96], %166 {strides = array<i32>} : memref<8x128xf32, #tpu.memory_space<vmem>>, vector<8x128xf32>,
    %c0_97 = arith.constant 0 : index
    %c0_98 = arith.constant 0 : index
    %171 = vector.load %arg7[%c0_97, %c0_98] : memref<8x128xf32, #tpu.memory_space<vmem>>, vector<8x128xf32>
    tpu.vector_store %arg7[%c0_97, %c0_98], %169 {strides = array<i32>} : memref<8x128xf32, #tpu.memory_space<vmem>>, vector<8x128xf32>,
    return
  }
  func.func @transform_0(%arg0: i32, %arg1: i32) -> (i32, i32, i32) {
    %c0_i32 = arith.constant 0 : i32
    %c0_i32_0 = arith.constant 0 : i32
    %c0_i32_1 = arith.constant 0 : i32
    return %arg0, %c0_i32, %c0_i32_0 : i32, i32, i32
  }
  func.func @transform_1(%arg0: i32, %arg1: i32) -> (i32, i32, i32) {
    %c0_i32 = arith.constant 0 : i32
    %c0_i32_0 = arith.constant 0 : i32
    return %arg0, %arg1, %c0_i32 : i32, i32, i32
  }
  func.func @transform_2(%arg0: i32, %arg1: i32) -> (i32, i32) {
    %c0_i32 = arith.constant 0 : i32
    %c0_i32_0 = arith.constant 0 : i32
    return %arg1, %c0_i32 : i32, i32
  }
  func.func @transform_3(%arg0: i32, %arg1: i32) -> (i32, i32) {
    %c0_i32 = arith.constant 0 : i32
    %c0_i32_0 = arith.constant 0 : i32
    %c0_i32_1 = arith.constant 0 : i32
    return %c0_i32, %c0_i32_0 : i32, i32
  }
  func.func @transform_4(%arg0: i32, %arg1: i32) -> (i32, i32) {
    %c0_i32 = arith.constant 0 : i32
    return %arg0, %arg1 : i32, i32
  }
  func.func @transform_5(%arg0: i32, %arg1: i32) -> (i32, i32) {
    %c0_i32 = arith.constant 0 : i32
    return %arg0, %arg1 : i32, i32
  }
}

</mosaic_0001>

<bundles_post_ra>
// kernel: criterion_all.1
= control target key start
LH: loop header
LB: loop body
LE: loop exit
PB: predicated region body
PF: predicated region fallthrough
CT: control target
= control target key end

     0   :  { %s1997_s0 = inlined_call_operand.hbm [shape: bf16[2,32,8], index: 0, kind: input, shape index: {}]   ;;  %s1998_s1 = inlined_call_operand.hbm [shape: s32[2,16,128], index: 1, kind: input, shape index: {}]   ;;  %s1999_s2 = inlined_call_operand.hbm [shape: bf16[16,8], index: 2, kind: input, shape index: {}]   ;;  %s2000_s3 = inlined_call_operand.hbm [shape: bf16[8,128], index: 3, kind: input, shape index: {}]   ;;  %s2001_s4 = inlined_call_operand.hbm [shape: f32[16,128], index: 4, kind: output, shape index: {0}]   ;;  %s2002_s5 = inlined_call_operand.hbm [shape: f32[16,128], index: 5, kind: output, shape index: {1}]  }
   0x1   :  { %2010 = sst [smem:[#allocation24_spill]] %s1997_s0 }
   0x2   :  { %2011 = sst [smem:[#allocation25_spill]] %s1999_s2 }
   0x3   :  { %2012 = sst [smem:[#allocation26_spill]] %s2000_s3 }
   0x4   :  { %11 = vsyncpa [#allocation5], 0 }
   0x5   :  { %13 = vsyncpa [#allocation5 + $0x1], 0 }
   0x6   :  { %14 = vsyncpa [#allocation8], 0 }
   0x7   :  { %16 = vsyncpa [#allocation8 + $0x1], 0 }
   0x8   :  { %17 = vsyncpa [#allocation11], 0 }
   0x9   :  { %18 = vsyncpa [#allocation6], 0 }
   0xa   :  { %20 = vsyncpa [#allocation6 + $0x1], 0 }
   0xb   :  { %21 = vsyncpa [#allocation14], 0 }
   0xc   :  { %23 = vsyncpa [#allocation14 + $0x1], 0  ;;  %s1562_s18 = smov 0   ;;  %s1564_s19 = smov 0  }
   0xd   :  { %s1566_s20 = smov 0   ;;  %s1568_s21 = smov 0  }
   0xe   :  { %s1570_s22 = smov 0   ;;  %s1572_s23 = smov 0  }
   0xf LB: > { %2013 = sst [smem:[#allocation21_spill]] %s1514_s22  ;;  %s1593_s24 = sadd.s32 4294967295, %s1518_s23   ;;  %s1518_s23 = sphi %s1572_s23, %s29_s23   ;;  %s1514_s22 = sphi %s1570_s22, %s2038_s22   ;;  %s1510_s21 = sphi %s1568_s21, %s2037_s21   ;;  %s1506_s20 = sphi %s1566_s20, %s2041_s20   ;;  %s1502_s19 = sphi %s1564_s19, %s2040_s19   ;;  %s1498_s18 = sphi %s1562_s18, %s2039_s18  }
  0x10   : > { %s1055_s25 = sadd.s32 4294967294, %s1518_s23   ;;  %p61_p0 = scmp.ne.s32.totalorder %s1502_s19, %s1498_s18 }
  0x11   : > { %p2003_p1 = scmp.eq.s32.totalorder %s1593_s24, 0  ;;  %p168_p3 = scmp.eq.s32.totalorder %s1055_s25, 1 }
  0x12   : > { %p1056_p5 = scmp.ge.s32.totalorder %s1518_s23, 1  ;;  %p203_p7 = scmp.lt.s32.totalorder %s1518_s23, 3 }
  0x13   : > { %p1602_p4 = por %p2003_p1, %p61_p0  ;;  %p1607_p6 = por %p168_p3, %p61_p0 }
  0x14   : > { %p1612_p8 = pnand %p1056_p5, %p203_p7  ;;  %s1520_s29 = smov [#allocation9]  }
  0x15   : > { %s2014_s26 = scalar_select %p1602_p4, 1, 0 }
  0x16   : > { %s2015_s27 = scalar_select %p1607_p6, 1, 0 }
  0x17   : > { %s218_s30 = sshll.u32 %s1520_s29, 4  ;;  %p1172_p9 = pneg %p1612_p8  ;;  %s1616_s30 = int_to_ptr.vmem [resolvable:$true] %s218_s30 }
  0x18   : > { %s1521_s7 = smov [#allocation10]   ;;  %s2018_s2 = sld [smem:[#allocation25_spill]] }
  0x19   : > { %p1623_p11 = pnand %p1172_p9, %p2003_p1  ;;  %s232_s8 = sshll.u32 %s1521_s7, 4  ;;  %s1627_s8 = int_to_ptr.vmem [resolvable:$true] %s232_s8 }
  0x1b   : > { %p1278_p13 = pneg %p1623_p11 }
  0x1e   : > { %s1276_s11 = scalar_lea.hbm %s2018_s2, 128 }
  0x1f   : > { %p1277_p12 = scmp.ne.s32.totalorder %s2018_s2, %s1276_s11  ;;  %p1283_p5 = scmp.lt.u32.totalorder %s1276_s11, %s2018_s2 }
  0x21   : > { %p1279_p0 = pnand %p1278_p13, %p1277_p12 }
  0x23   : > { %p1280_p3 = pneg %p1279_p0 }
  0x25   : > { %p1285_p7 = pnand %p1283_p5, %p1280_p3 }
  0x27   : > { %1288 = shalt.err (!%p1285_p7)
}
  0x28   : > { %s1289_s16 = scalar_lea.vmem %s1616_s30, 128  ;;  %p1297_p2 = scmp.lt.s32.totalorder %s1616_s30, %s1616_s30 }
  0x29   : > { %p1290_p9 = scmp.ne.s32.totalorder %s1616_s30, %s1289_s16  ;;  %p1298_p12 = scmp.lt.s32.totalorder %s1289_s16, %s1289_s16 }
  0x2b   : > { %p1292_p10 = pnand %p1290_p9, %p1278_p13  ;;  %p1299_p0 = por %p1298_p12, %p1297_p2 }
  0x2d   : > { %p1293_p1 = pneg %p1292_p10 }
  0x2f   : > { %p1300_p6 = pnand %p1299_p0, %p1293_p1 }
  0x31   : > { %1303 = shalt.err (!%p1300_p6)
}
  0x32   : > { %s2004_s17 = smov 64   ;;  %s2005_s25 = smov 4  }
  0x33   : > { %1175 = dma.hbm_to_vmem [thread:$0]  (!%p1623_p11), %s2018_s2, 128, %s1616_s30, [#allocation8], %s2004_s17, %s2004_s17, %s2005_s25  }
  0x34   : > { %s2019_s3 = sld [smem:[#allocation26_spill]] }
  0x3a   : > { %s1304_s11 = scalar_lea.hbm %s2019_s3, 64 }
  0x3b   : > { %p1305_p1 = scmp.ne.s32.totalorder %s2019_s3, %s1304_s11  ;;  %p1311_p10 = scmp.lt.u32.totalorder %s1304_s11, %s2019_s3 }
  0x3d   : > { %p1307_p2 = pnand %p1305_p1, %p1278_p13 }
  0x3f   : > { %p1308_p6 = pneg %p1307_p2 }
  0x41   : > { %p1313_p3 = pnand %p1311_p10, %p1308_p6 }
  0x43   : > { %1316 = shalt.err (!%p1313_p3)
}
  0x44   : > { %s1317_s30 = scalar_lea.vmem %s1627_s8, 64  ;;  %p1325_p12 = scmp.lt.s32.totalorder %s1627_s8, %s1627_s8 }
  0x45   : > { %p1318_p5 = scmp.ne.s32.totalorder %s1627_s8, %s1317_s30  ;;  %p1326_p0 = scmp.lt.s32.totalorder %s1317_s30, %s1317_s30 }
  0x47   : > { %p1320_p7 = pnand %p1318_p5, %p1278_p13  ;;  %p1327_p1 = por %p1326_p0, %p1325_p12 }
  0x49   : > { %p1321_p9 = pneg %p1320_p7 }
  0x4b   : > { %p1328_p2 = pnand %p1327_p1, %p1321_p9 }
  0x4d   : > { %1331 = shalt.err (!%p1328_p2)
}
  0x4e   : > { %1178 = dma.hbm_to_vmem [thread:$0]  (!%p1623_p11), %s2019_s3, 64, %s1627_s8, [#allocation11]  }
  0x4f   : > { %s41_s7 = sadd.s32 1, %s1514_s22  ;;  %s48_s9 = sadd.s32 1, %s1506_s20 }
  0x50   : > { %p43_p13 = scmp.ge.s32.totalorder %s41_s7, 2  ;;  %p55_p6 = scmp.ne.s32.totalorder %s1506_s20, %s1502_s19 }
  0x51   : > { %p56_p10 = scmp.eq.s32.totalorder %s1518_s23, 0  ;;  %p1195_p3 = scmp.lt.s32.totalorder %s1518_s23, 2 }
  0x52   : > { %s2043_s7 = smov (%p43_p13, %s41_s7), 0  ;;  %p2021_p7 = scmp.eq.s32.totalorder %s1593_s24, 1 }
  0x53   : > { %2020 = sst [smem:[#allocation22_spill]] %s2043_s7  ;;  %p57_p5 = por %p56_p10, %p55_p6 }
  0x54   : > { %p1694_p9 = por %p2021_p7, %p55_p6  ;;  %s45_s10 = ssub.s32 %s1514_s22, %s2043_s7 }
  0x55   : > { %s243_s11 = sand.u32 1, %s1506_s20   ;;  %p46_p12 = scmp.eq.s32.totalorder %s45_s10, 0 }
  0x56   : > { %s2022_s6 = scalar_select %p1694_p9, 1, 0 }
  0x57   : > { %s1701_s8 = sshll.u32 %s243_s11, 4  ;;  %s1090_s12 = sshll.u32 %s1514_s22, 8 }
  0x58   : > { %s1705_s13 = scalar_select %p46_p12, %s1506_s20, %s48_s9  }
  0x59   : > { %s2024_s0 = sld [smem:[#allocation24_spill]]  ;;  %s247_s16 = scalar_lea.vmem [#allocation4], %s1701_s8 }
  0x5a   : > { %2023 = sst [smem:[#allocation23_spill]] %s1705_s13  ;;  %s254_s29 = sshll.u32 %s247_s16, 4  ;;  %s1719_s29 = int_to_ptr.vmem [resolvable:$true] %s254_s29 }
  0x5b   : > { %p1715_p11 = pnand %p1195_p3, %p57_p5  ;;  %s1724_s14 = scalar_lea.hbm %s1998_s1, %s1090_s12 }
  0x5c   : > { %s1726_s15 = scalar_lea.sflag [#allocation5], %s243_s11 }
  0x5d   : > { %p1334_p1 = pneg %p1715_p11 }
  0x5f   : > { %s1710_s30 = scalar_lea.hbm %s2024_s0, %s1090_s12  ;;  %s1337_s3 = scalar_lea.hbm %s2024_s0, 512 }
  0x60   : > { %s1332_s25 = scalar_lea.hbm %s1710_s30, 256  ;;  %p1338_p6 = scmp.lt.u32.totalorder %s1710_s30, %s2024_s0 }
  0x61   : > { %p1333_p0 = scmp.ne.s32.totalorder %s1710_s30, %s1332_s25  ;;  %p1339_p10 = scmp.lt.u32.totalorder %s1337_s3, %s1332_s25 }
  0x62   : > { %p1341_p5 = scmp.lt.u32.totalorder %s1332_s25, %s1710_s30 }
  0x63   : > { %p1335_p2 = pnand %p1334_p1, %p1333_p0  ;;  %p1340_p3 = por %p1339_p10, %p1338_p6 }
  0x65   : > { %p1336_p13 = pneg %p1335_p2  ;;  %p1342_p7 = por %p1341_p5, %p1340_p3 }
  0x67   : > { %p1343_p12 = pnand %p1342_p7, %p1336_p13 }
  0x69   : > { %1346 = shalt.err (!%p1343_p12)
}
  0x6a   : > { %s1347_s17 = scalar_lea.vmem %s1719_s29, 256  ;;  %s1524_s2 = smov [#allocation4]  }
  0x6b   : > { %p1348_p0 = scmp.ne.s32.totalorder %s1719_s29, %s1347_s17  ;;  %s1352_s11 = sshll.u32 %s1524_s2, 4  ;;  %s1353_s11 = int_to_ptr.vmem [resolvable:$false] %s1352_s11 }
  0x6c   : > { %s1354_s22 = scalar_lea.vmem %s1353_s11, 512  ;;  %p1355_p4 = scmp.lt.s32.totalorder %s1719_s29, %s1353_s11 }
  0x6d   : > { %p1350_p2 = pnand %p1348_p0, %p1334_p1  ;;  %p1356_p6 = scmp.lt.s32.totalorder %s1354_s22, %s1347_s17 }
  0x6f   : > { %p1351_p9 = pneg %p1350_p2  ;;  %p1357_p10 = por %p1356_p6, %p1355_p4 }
  0x71   : > { %p1358_p3 = pnand %p1357_p10, %p1351_p9 }
  0x73   : > { %1361 = shalt.err (!%p1358_p3)
}
  0x74   : > { %s2026_s3 = smov 4   ;;  %s2027_s25 = smov 64  }
  0x75   : > { %1182 = dma.hbm_to_vmem [thread:$0]  (!%p1715_p11), %s1710_s30, 256, %s1719_s29, %s1726_s15, %s2027_s25, %s2027_s25, %s2026_s3  }
  0x76   : > { %s268_s7 = scalar_lea.vmem [#allocation7], %s1701_s8  ;;  %s264_s9 = sand.u32 1, %s1518_s23  }
  0x77   : > { %s277_s12 = sshll.u32 %s268_s7, 4  ;;  %s1761_s16 = scalar_lea.sflag [#allocation8], %s264_s9  ;;  %s1759_s12 = int_to_ptr.vmem [resolvable:$true] %s277_s12 }
  0x78   : > { %s1362_s17 = scalar_lea.hbm %s1724_s14, 256  ;;  %s1367_s22 = scalar_lea.hbm %s1998_s1, 512 }
  0x79   : > { %p1363_p4 = scmp.ne.s32.totalorder %s1724_s14, %s1362_s17  ;;  %p1368_p5 = scmp.lt.u32.totalorder %s1724_s14, %s1998_s1 }
  0x7a   : > { %p1369_p7 = scmp.lt.u32.totalorder %s1367_s22, %s1362_s17  ;;  %p1371_p0 = scmp.lt.u32.totalorder %s1362_s17, %s1724_s14 }
  0x7b   : > { %p1365_p9 = pnand %p1363_p4, %p1334_p1 }
  0x7c   : > { %p1370_p12 = por %p1369_p7, %p1368_p5 }
  0x7d   : > { %p1366_p13 = pneg %p1365_p9 }
  0x7e   : > { %p1372_p2 = por %p1371_p0, %p1370_p12 }
  0x80   : > { %p1373_p6 = pnand %p1372_p2, %p1366_p13 }
  0x82   : > { %1376 = shalt.err (!%p1373_p6)
}
  0x83   : > { %s1377_s8 = scalar_lea.vmem %s1759_s12, 256  ;;  %s1525_s30 = smov [#allocation7]  }
  0x84   : > { %p1378_p10 = scmp.ne.s32.totalorder %s1759_s12, %s1377_s8  ;;  %s1382_s29 = sshll.u32 %s1525_s30, 4  ;;  %s1383_s29 = int_to_ptr.vmem [resolvable:$false] %s1382_s29 }
  0x85   : > { %s1384_s0 = scalar_lea.vmem %s1383_s29, 512  ;;  %p1385_p9 = scmp.lt.s32.totalorder %s1759_s12, %s1383_s29 }
  0x86   : > { %p1380_p3 = pnand %p1378_p10, %p1334_p1  ;;  %p1386_p5 = scmp.lt.s32.totalorder %s1384_s0, %s1377_s8 }
  0x88   : > { %p1381_p4 = pneg %p1380_p3  ;;  %p1387_p7 = por %p1386_p5, %p1385_p9 }
  0x8a   : > { %p1388_p12 = pnand %p1387_p7, %p1381_p4 }
  0x8c   : > { %1391 = shalt.err (!%p1388_p12)
}
  0x8d   : > { %s1526_s13 = smov 128   ;;  %s1527_s15 = smov 8  }
  0x8e   : > { %1185 = dma.hbm_to_vmem [thread:$0]  (!%p1715_p11), %s1724_s14, 256, %s1759_s12, %s1761_s16, %s1526_s13, %s1526_s13, %s1527_s15  }
  0x8f   : > { %289 = sbr.rel (%p1612_p8) target bundleno = 691 (0x2b3), region = 36  ;;  %s1790_s3 = sand.u32 (!%p1612_p8), 1, %s1502_s19  }
  0x90   : > { %s1067_s25 = sshll.u32 (!%p1612_p8), %s1790_s3, 4  ;;  %s292_s7 = scalar_lea.sflag (!%p1612_p8), [#allocation5], %s1790_s3 }
  0x91   : > { %s1794_s9 = scalar_lea.vmem (!%p1612_p8), [#allocation4], %s1067_s25  ;;  %p2028_p1 = scmp.ne.s32.totalorder (!%p1612_p8), %s2014_s26, 0 }
  0x96   : > { %1473 = dma.done.wait (%p2028_p1), %s292_s7, 256  }
  0x97   : > { %1475 = vsyncadd (%p2028_p1), %s292_s7, 4294967040  ;;  %s300_s10 = sand.u32 1, %s1593_s24   ;;  %s1801_s14 = scalar_lea.vmem [#allocation7], %s1067_s25 }
  0x98   : > { %s301_s28 = scalar_lea.sflag [#allocation8], %s300_s10 }
  0x99   : > { %1477 = dma.done.wait (%p2028_p1), %s301_s28, 256  }
  0x9a   : > { %1479 = vsyncadd (%p2028_p1), %s301_s28, 4294967040  ;;  %p2029_p8 = scmp.eq.s32.totalorder %s1593_s24, 0 }
  0x9c   : > { %1481 = dma.done.wait (%p2029_p8), [#allocation8], 128   ;;  %p2030_p11 = pmov %p2029_p8 }
  0x9d   : > { %p2031_p13 = pmov %p2029_p8 }
  0x9e   : > { %1483 = vsyncadd (%p2030_p11), [#allocation8], 4294967168 }
  0x9f   : > { %1485 = dma.done.wait (%p2031_p13), [#allocation11], 64   ;;  %p2032_p0 = pmov %p2029_p8 }
  0xa0   : > { %v1528_v0 = vmov 0.0   ;;  %vm1529_vm0 = vmmov 0   ;;  %vm362_vm1 = vcmask 1043456   ;;  %v356_v1 = vld [vmem:[#allocation10] sm:$0xf]  ;;  %vm358_vm2 = vcmask 64512  }
  0xa1   : > { %1487 = vsyncadd (%p2032_p0), [#allocation11], 4294967232  ;;  %1108 = vmatprep.subr.bf16.mxu0 %v1528_v0  ;;  %1114 = vmatprep.subr.bf16.mxu1 %v1528_v0  ;;  %v364_v2 = vsel %vm362_vm1, %v356_v1, 0  ;;  %v357_v3 = vld [vmem:[%s1794_s9] sm:$0xf]  ;;  %v1857_v36 = vld [vmem:[%s1801_s14 + $0x8] sm:$0xff] }
  0xa2   : > { %1110 = vmatprep.mubr.msk.bf16.mxu0 %vm1529_vm0, %v1528_v0  ;;  %1116 = vmatprep.mubr.msk.bf16.mxu1 %vm1529_vm0, %v1528_v0  ;;  %v408_v4 = vld [vmem:[%s1794_s9 + $0x4] sm:$0xf]  ;;  %v455_v5 = vld [vmem:[%s1794_s9 + $0x8] sm:$0xf]  ;;  %v502_v6 = vld [vmem:[%s1794_s9 + $0xc] sm:$0xf] }
  0xa3   : > { %1109 = vmatpush3.bf16.msra.mxu0 %v364_v2  ;;  %1115 = vmatpush3.bf16.msra.mxu1 %v364_v2  ;;  %v1255_v31 = vld [vmem:[#allocation9] sm:$0xff]   ;;  %vm852_vm3 = vcmp.ne.s32.totalorder %v1857_v36, 255  ;;  %s1071_s24 = sshll.u32 %s1790_s3, 3  ;;  %s1086_s26 = sshll.u32 %s1510_s21, 7 }
  0xa4   : > { %1120 = vmatprep.subr.bf16.mxu0 %v1528_v0  ;;  %1126 = vmatprep.subr.bf16.mxu1 %v1528_v0  ;;  %v1861_v37 = vld [vmem:[%s1801_s14] sm:$0xff]  ;;  %v1083_v39 = vsel %vm852_vm3, 1.0, %v1528_v0  ;;  %s348_s12 = scalar_lea.vmem [#allocation13], %s1071_s24  ;;  %s1879_s2 = scalar_lea.hbm %s2002_s5, %s1086_s26 }
  0xa5   : > { %vm794_vm4 = vcmp.ne.s32.totalorder %v1861_v37, 255  ;;  %s895_s11 = sshll.u32 %s348_s12, 4  ;;  %s867_s22 = scalar_lea.sflag [#allocation14], %s1790_s3  ;;  %s896_s11 = int_to_ptr.vmem [resolvable:$true] %s895_s11 }
  0xa6   : > { %1111 = vmatmul.mubr.msk.bf16.vlgmr.msra.gmra.mrb[0].mxu0 %vm358_vm2, %v357_v3  ;;  %1117 = vmatmul.mubr.msk.bf16.vlgmr.msra.gmra.mrb[0].mxu1 %vm358_vm2, %v408_v4  ;;  %v1082_v38 = vsel %vm794_vm4, 1.0, %v1528_v0  ;;  %s1392_s8 = scalar_lea.vmem %s896_s11, 128  ;;  %p2033_p6 = scmp.ne.s32.totalorder %s2022_s6, 0 }
  0xa7   : > { %1121 = vmatpush3.bf16.msra.mxu0 %v364_v2  ;;  %1127 = vmatpush3.bf16.msra.mxu1 %v364_v2  ;;  %v858_v40 = vadd.f32 %v1083_v39, %v1082_v38  ;;  %p1393_p2 = scmp.ne.s32.totalorder %s896_s11, %s1392_s8  ;;  %s1530_s30 = smov [#allocation13]  }
  0xa8   : > { %1122 = vmatprep.mubr.msk.bf16.mxu0 %vm1529_vm0, %v1528_v0  ;;  %1128 = vmatprep.mubr.msk.bf16.mxu1 %vm1529_vm0, %v1528_v0  ;;  %s1396_s29 = sshll.u32 %s1530_s30, 4  ;;  %s1397_s29 = int_to_ptr.vmem [resolvable:$false] %s1396_s29 }
  0xa9   : > { %1132 = vmatprep.subr.bf16.mxu0 %v1528_v0  ;;  %1138 = vmatprep.subr.bf16.mxu1 %v1528_v0  ;;  %860 = vst [vmem:[%s348_s12] sm:$0xff] %v858_v40  ;;  %p1394_p10 = pnand %p1393_p2, %p2033_p6  ;;  %s1398_s0 = scalar_lea.vmem %s1397_s29, 256 }
  0xaa   : > { %p1399_p4 = scmp.lt.s32.totalorder %s896_s11, %s1397_s29  ;;  %p1400_p9 = scmp.lt.s32.totalorder %s1398_s0, %s1392_s8 }
  0xab   : > { %p1395_p3 = pneg %p1394_p10 }
  0xac   : > { %p1401_p5 = por %p1400_p9, %p1399_p4 }
  0xae   : > { %1123 = vmatmul.mubr.msk.bf16.vlgmr.msra.gmra.mrb[4].mxu0 %vm358_vm2, %v455_v5  ;;  %1129 = vmatmul.mubr.msk.bf16.vlgmr.msra.gmra.mrb[4].mxu1 %vm358_vm2, %v502_v6  ;;  %p1402_p7 = pnand %p1401_p5, %p1395_p3 }
  0xaf   : > { %1134 = vmatprep.mubr.msk.bf16.mxu0 %vm1529_vm0, %v1528_v0  ;;  %1140 = vmatprep.mubr.msk.bf16.mxu1 %vm1529_vm0, %v1528_v0 }
 0x179   : > { %v400_v7 = vpop.f32.mrb[0].mxu0  ;;  %v446_v8 = vpop.f32.mrb[0].mxu1 }
 0x17a   : > { %v406_v9 = vpack.c.bf16 %v400_v7, %v400_v7  ;;  %v452_v10 = vpack.c.bf16 %v446_v8, %v446_v8  ;;  %v1112_v11 = vpop.f32.mrb[1].mxu0  ;;  %v1118_v12 = vpop.f32.mrb[1].mxu1 }
 0x17b   : > { %v403_v13 = vpop.f32.mrb[2].mxu0  ;;  %v449_v14 = vpop.f32.mrb[2].mxu1 }
 0x17c   : > { %407 = vst [vmem:[#allocation2] sm:$0xf] %v406_v9  ;;  %454 = vst [vmem:[#allocation2 + $0x4] sm:$0xf] %v452_v10  ;;  %v1113_v15 = vpop.f32.mrb[3].mxu0  ;;  %v1119_v16 = vpop.f32.mrb[3].mxu1 }
 0x181   : > { %v493_v17 = vpop.f32.mrb[4].mxu0  ;;  %v540_v18 = vpop.f32.mrb[4].mxu1 }
 0x182   : > { %v499_v19 = vpack.c.bf16 %v493_v17, %v493_v17  ;;  %v546_v20 = vpack.c.bf16 %v540_v18, %v540_v18  ;;  %v1124_v21 = vpop.f32.mrb[5].mxu0  ;;  %v1130_v22 = vpop.f32.mrb[5].mxu1 }
 0x183   : > { %v496_v23 = vpop.f32.mrb[6].mxu0  ;;  %v543_v24 = vpop.f32.mrb[6].mxu1  ;;  %v551_v25 = vld [vmem:[#allocation2] sm:$0xf]  ;;  %v609_v26 = vld [vmem:[#allocation2 + $0x4] sm:$0xf] }
 0x184   : > { %501 = vst [vmem:[#allocation2 + $0x8] sm:$0xf] %v499_v19  ;;  %548 = vst [vmem:[#allocation2 + $0xc] sm:$0xf] %v546_v20  ;;  %v1125_v27 = vpop.f32.mrb[7].mxu0  ;;  %v1131_v28 = vpop.f32.mrb[7].mxu1 }
 0x185   : > { %v563_v29 = vsel %vm362_vm1, %v551_v25, 0  ;;  %v611_v30 = vsel %vm362_vm1, %v609_v26, 0 }
 0x186   : > { %1133 = vmatpush3.bf16.msra.mxu0 %v563_v29  ;;  %1139 = vmatpush3.bf16.msra.mxu1 %v611_v30 }
 0x187   : > { %1144 = vmatprep.subr.bf16.mxu0 %v1528_v0  ;;  %1150 = vmatprep.subr.bf16.mxu1 %v1528_v0 }
 0x189   : > { %1135 = vmatmul.mubr.msk.bf16.vlgmr.msra.gmra.mrb[8].mxu0 %vm358_vm2, %v1255_v31  ;;  %1141 = vmatmul.mubr.msk.bf16.vlgmr.msra.gmra.mrb[8].mxu1 %vm358_vm2, %v1255_v31 }
 0x18a   : > { %1146 = vmatprep.mubr.msk.bf16.mxu0 %vm1529_vm0, %v1528_v0  ;;  %1152 = vmatprep.mubr.msk.bf16.mxu1 %vm1529_vm0, %v1528_v0 }
 0x18b   : > { %v658_v32 = vld [vmem:[#allocation2 + $0x8] sm:$0xf]  ;;  %v707_v33 = vld [vmem:[#allocation2 + $0xc] sm:$0xf] }
 0x18c   : > { %v660_v34 = vsel %vm362_vm1, %v658_v32, 0  ;;  %v709_v35 = vsel %vm362_vm1, %v707_v33, 0 }
 0x18d   : > { %1145 = vmatpush3.bf16.msra.mxu0 %v660_v34  ;;  %1151 = vmatpush3.bf16.msra.mxu1 %v709_v35 }
 0x191   : > { %1147 = vmatmul.mubr.msk.bf16.vlgmr.msra.gmra.mrb[12].mxu0 %vm358_vm2, %v1255_v31  ;;  %1153 = vmatmul.mubr.msk.bf16.vlgmr.msra.gmra.mrb[12].mxu1 %vm358_vm2, %v1255_v31 }
 0x192   : > { %1405 = shalt.err (!%p1402_p7)
}
 0x193   : > { %s1406_s13 = scalar_lea.hbm %s1879_s2, 128  ;;  %s1410_s7 = scalar_lea.hbm %s2002_s5, 256 }
 0x194   : > { %p1407_p12 = scmp.ne.s32.totalorder %s1879_s2, %s1406_s13  ;;  %p1411_p11 = scmp.lt.u32.totalorder %s1879_s2, %s2002_s5 }
 0x195   : > { %p1412_p13 = scmp.lt.u32.totalorder %s1410_s7, %s1406_s13  ;;  %p1414_p2 = scmp.lt.u32.totalorder %s1406_s13, %s1879_s2 }
 0x196   : > { %p1408_p1 = pnand %p1407_p12, %p2033_p6 }
 0x197   : > { %p1413_p0 = por %p1412_p13, %p1411_p11 }
 0x198   : > { %p1409_p8 = pneg %p1408_p1 }
 0x199   : > { %p1415_p10 = por %p1414_p2, %p1413_p0 }
 0x19b   : > { %p1416_p3 = pnand %p1415_p10, %p1409_p8 }
 0x19d   : > { %1419 = shalt.err (!%p1416_p3)
}
 0x19e   : > { %1169 = dma.vmem_to_hbm [thread:$0]  (%p2033_p6), %s896_s11, 128, %s1879_s2, %s867_s22   ;;  %vm758_vm5 = vcmp.eq.s32.totalorder %v1861_v37, 0  ;;  %vm807_vm6 = vcmp.eq.s32.totalorder %v1857_v36, 0  ;;  %vm763_vm7 = vcmp.eq.s32.totalorder %v1861_v37, 1  ;;  %vm768_vm8 = vcmp.eq.s32.totalorder %v1861_v37, 2 }
 0x19f   : > { %vm815_vm9 = vcmp.eq.s32.totalorder %v1857_v36, 1  ;;  %vm823_vm10 = vcmp.eq.s32.totalorder %v1857_v36, 2  ;;  %vm773_vm11 = vcmp.eq.s32.totalorder %v1861_v37, 3  ;;  %vm831_vm12 = vcmp.eq.s32.totalorder %v1857_v36, 3  ;;  %s341_s28 = scalar_lea.vmem [#allocation12], %s1071_s24  ;;  %s1948_s17 = scalar_lea.hbm %s2001_s4, %s1086_s26 }
 0x1a0   : > { %s881_s14 = sshll.u32 %s341_s28, 4  ;;  %s862_s24 = scalar_lea.sflag [#allocation6], %s1790_s3  ;;  %s1950_s14 = int_to_ptr.vmem [resolvable:$true] %s881_s14 }
 0x1a1   : > { %s1420_s2 = scalar_lea.vmem %s1950_s14, 128  ;;  %s1531_s11 = smov [#allocation12]  }
 0x1a2   : > { %p1421_p4 = scmp.ne.s32.totalorder %s1950_s14, %s1420_s2  ;;  %s1424_s22 = sshll.u32 %s1531_s11, 4  ;;  %s1425_s22 = int_to_ptr.vmem [resolvable:$false] %s1424_s22 }
 0x1a3   : > { %s1426_s21 = scalar_lea.vmem %s1425_s22, 256  ;;  %p1427_p7 = scmp.lt.s32.totalorder %s1950_s14, %s1425_s22 }
 0x1a4   : > { %p1422_p9 = pnand %p1421_p4, %p2033_p6  ;;  %p1428_p12 = scmp.lt.s32.totalorder %s1426_s21, %s1420_s2 }
 0x1a6   : > { %p1423_p5 = pneg %p1422_p9  ;;  %p1429_p1 = por %p1428_p12, %p1427_p7 }
 0x1a8   : > { %p1430_p8 = pnand %p1429_p1, %p1423_p5 }
 0x25c   : > { %v599_v41 = vpop.f32.mrb[8].mxu0  ;;  %v647_v42 = vpop.f32.mrb[8].mxu1 }
 0x25d   : > { %v1136_v43 = vpop.f32.mrb[9].mxu0  ;;  %v1142_v44 = vpop.f32.mrb[9].mxu1 }
 0x25e   : > { %v602_v45 = vpop.f32.mrb[10].mxu0  ;;  %v650_v46 = vpop.f32.mrb[10].mxu1 }
 0x25f   : > { %v606_v47 = vpack.c.bf16 %v602_v45, %v599_v41  ;;  %v1137_v48 = vpop.f32.mrb[11].mxu0  ;;  %v654_v49 = vpack.c.bf16 %v650_v46, %v647_v42  ;;  %v1143_v50 = vpop.f32.mrb[11].mxu1 }
 0x261   : > { %607 = vst [vmem:[#allocation3] sm:$0xff] %v606_v47  ;;  %656 = vst [vmem:[#allocation3 + $0x8] sm:$0xff] %v654_v49 }
 0x264   : > { %v696_v51 = vpop.f32.mrb[12].mxu0  ;;  %v745_v52 = vpop.f32.mrb[12].mxu1 }
 0x265   : > { %v1148_v53 = vpop.f32.mrb[13].mxu0  ;;  %v1154_v54 = vpop.f32.mrb[13].mxu1 }
 0x266   : > { %v699_v55 = vpop.f32.mrb[14].mxu0  ;;  %v748_v56 = vpop.f32.mrb[14].mxu1 }
 0x267   : > { %v703_v57 = vpack.c.bf16 %v699_v55, %v696_v51  ;;  %v752_v58 = vpack.c.bf16 %v748_v56, %v745_v52  ;;  %v1149_v59 = vpop.f32.mrb[15].mxu0  ;;  %v1155_v60 = vpop.f32.mrb[15].mxu1 }
 0x268   : > { %v802_v61 = vld [vmem:[#allocation3] sm:$0xf0]  ;;  %v809_v62 = vld [vmem:[#allocation3 + $0x8] sm:$0xf0]  ;;  %v756_v63 = vld [vmem:[#allocation3] ss:$8 sps:$4 sm:$0xff]  }
 0x269   : > { %705 = vst [vmem:[#allocation3 + $0x10] sm:$0xff] %v703_v57  ;;  %754 = vst [vmem:[#allocation3 + $0x18] sm:$0xff] %v752_v58  ;;  %v804_v0 = vrot.slane %v802_v61, 4  ;;  %v811_v1 = vrot.slane %v809_v62, 4  ;;  %v757_v2 = vunpack.c.l.bf16 %v756_v63  ;;  %v1899_v3 = vunpack.c.h.bf16 %v756_v63 }
 0x26b   : > { %v1901_v4 = vunpack.c.l.bf16 %v804_v0  ;;  %v1903_v5 = vunpack.c.l.bf16 %v811_v1  ;;  %v762_v9 = vmax.f32 %v757_v2, %v1899_v3  ;;  %v759_v53 = vsel %vm758_vm5, %v757_v2, 0.0 }
 0x26c   : > { %v764_v57 = vsel %vm763_vm7, %v1899_v3, %v759_v53 }
 0x26d   : > { %v814_v15 = vmax.f32 %v1901_v4, %v1903_v5  ;;  %v808_v56 = vsel %vm807_vm6, %v1901_v4, 0.0 }
 0x26e   : > { %v816_v61 = vsel %vm815_vm9, %v1903_v5, %v808_v56 }
 0x270   : > { %v765_v6 = vld [vmem:[#allocation3 + $0x10] ss:$8 sps:$4 sm:$0xff]   ;;  %v817_v7 = vld [vmem:[#allocation3 + $0x10] sm:$0xf0]  ;;  %v825_v8 = vld [vmem:[#allocation3 + $0x18] sm:$0xf0] }
 0x271   : > { %v1906_v10 = vunpack.c.l.bf16 %v765_v6  ;;  %v819_v11 = vrot.slane %v817_v7, 4  ;;  %v827_v12 = vrot.slane %v825_v8, 4  ;;  %v1909_v14 = vunpack.c.h.bf16 %v765_v6 }
 0x273   : > { %v767_v13 = vmax.f32 %v762_v9, %v1906_v10  ;;  %v821_v16 = vunpack.c.l.bf16 %v819_v11  ;;  %v1914_v19 = vunpack.c.l.bf16 %v827_v12  ;;  %v769_v58 = vsel %vm768_vm8, %v1906_v10, %v764_v57 }
 0x274   : > { %v774_v0 = vsel %vm773_vm11, %v1909_v14, %v769_v58 }
 0x275   : > { %v772_v17 = vmax.f32 %v767_v13, %v1909_v14  ;;  %v822_v18 = vmax.f32 %v814_v15, %v821_v16  ;;  %v824_v62 = vsel %vm823_vm10, %v821_v16, %v816_v61 }
 0x277   : > { %v775_v20 = vsub.f32 %v757_v2, %v772_v17  ;;  %v779_v21 = vsub.f32 %v1899_v3, %v772_v17  ;;  %v783_v22 = vsub.f32 %v1906_v10, %v772_v17  ;;  %v787_v23 = vsub.f32 %v1909_v14, %v772_v17 }
 0x278   : > { %v830_v24 = vmax.f32 %v822_v18, %v1914_v19  ;;  %v832_v3 = vsel %vm831_vm12, %v1914_v19, %v824_v62 }
 0x279   : > { %v776_v25 = vmul.f32 1.442695, %v775_v20  ;;  %v780_v26 = vmul.f32 1.442695, %v779_v21  ;;  %v784_v27 = vmul.f32 1.442695, %v783_v22 }
 0x27a   : > { %v788_v28 = vmul.f32 1.442695, %v787_v23  ;;  %v833_v29 = vsub.f32 %v1901_v4, %v830_v24  ;;  %v837_v30 = vsub.f32 %v1903_v5, %v830_v24  ;;  %v841_v31 = vsub.f32 %v821_v16, %v830_v24 }
 0x27b   : > { %1256 = vpow2.f32 %v776_v25  ;;  %v845_v34 = vsub.f32 %v1914_v19, %v830_v24 }
 0x27c   : > { %1258 = vpow2.f32 %v780_v26  ;;  %v834_v32 = vmul.f32 1.442695, %v833_v29  ;;  %v838_v33 = vmul.f32 1.442695, %v837_v30  ;;  %v842_v35 = vmul.f32 1.442695, %v841_v31 }
 0x27d   : > { %1260 = vpow2.f32 %v784_v27  ;;  %v846_v38 = vmul.f32 1.442695, %v845_v34 }
 0x27e   : > { %1262 = vpow2.f32 %v788_v28 }
 0x27f   : > { %1264 = vpow2.f32 %v834_v32 }
 0x280   : > { %1266 = vpow2.f32 %v838_v33 }
 0x281   : > { %1268 = vpow2.f32 %v842_v35 }
 0x282   : > { %1270 = vpow2.f32 %v846_v38 }
 0x285   : > { %v1257_v39 = vpop.eup %1256 }
 0x286   : > { %v1259_v40 = vpop.eup %1258 }
 0x287   : > { %v1261_v41 = vpop.eup %1260  ;;  %v782_v42 = vadd.f32 %v1259_v40, %v1257_v39 }
 0x288   : > { %v1263_v43 = vpop.eup %1262 }
 0x289   : > { %v1265_v44 = vpop.eup %1264  ;;  %v786_v45 = vadd.f32 %v1261_v41, %v782_v42 }
 0x28a   : > { %v1267_v46 = vpop.eup %1266 }
 0x28b   : > { %v790_v47 = vadd.f32 %v1263_v43, %v786_v45  ;;  %v840_v48 = vadd.f32 %v1267_v46, %v1265_v44  ;;  %v1269_v49 = vpop.eup %1268 }
 0x28c   : > { %v1271_v51 = vpop.eup %1270 }
 0x28d   : > { %1272 = vlog2.f32 %v790_v47  ;;  %v844_v50 = vadd.f32 %v1269_v49, %v840_v48 }
 0x28f   : > { %v848_v52 = vadd.f32 %v1271_v51, %v844_v50 }
 0x291   : > { %1274 = vlog2.f32 %v848_v52 }
 0x297   : > { %v1273_v54 = vpop.eup %1272 }
 0x298   : > { %v792_v55 = vmul.f32 0.6931472, %v1273_v54 }
 0x29a   : > { %v793_v59 = vadd.f32 %v792_v55, %v772_v17 }
 0x29b   : > { %v1275_v60 = vpop.eup %1274 }
 0x29c   : > { %v850_v63 = vmul.f32 0.6931472, %v1275_v60  ;;  %v795_v1 = vsub.f32 %v793_v59, %v774_v0 }
 0x29e   : > { %v851_v2 = vadd.f32 %v850_v63, %v830_v24  ;;  %v796_v6 = vsel %vm794_vm4, %v795_v1, 0.0 }
 0x2a0   : > { %v853_v4 = vsub.f32 %v851_v2, %v832_v3 }
 0x2a2   : > { %v854_v5 = vsel %vm852_vm3, %v853_v4, 0.0 }
 0x2a3   : > { %v855_v7 = vadd.f32 %v854_v5, %v796_v6 }
 0x2a5   : > { %859 = vst [vmem:[%s341_s28] sm:$0xff] %v855_v7 }
 0x2a6   : > { %1433 = shalt.err (!%p1430_p8)
}
 0x2a7   : > { %s1434_s3 = scalar_lea.hbm %s1948_s17, 128  ;;  %s1438_s30 = scalar_lea.hbm %s2001_s4, 256 }
 0x2a8   : > { %p1435_p11 = scmp.ne.s32.totalorder %s1948_s17, %s1434_s3  ;;  %p1439_p2 = scmp.lt.u32.totalorder %s1948_s17, %s2001_s4 }
 0x2a9   : > { %p1440_p10 = scmp.lt.u32.totalorder %s1438_s30, %s1434_s3  ;;  %p1442_p4 = scmp.lt.u32.totalorder %s1434_s3, %s1948_s17 }
 0x2aa   : > { %p1436_p13 = pnand %p1435_p11, %p2033_p6 }
 0x2ab   : > { %p1441_p3 = por %p1440_p10, %p1439_p2 }
 0x2ac   : > { %p1437_p0 = pneg %p1436_p13 }
 0x2ad   : > { %p1443_p9 = por %p1442_p4, %p1441_p3 }
 0x2af   : > { %p1444_p5 = pnand %p1443_p9, %p1437_p0 }
 0x2b1   : > { %1447 = shalt.err (!%p1444_p5)
}
 0x2b2   : > { %1168 = dma.vmem_to_hbm [thread:$0]  (%p2033_p6), %s1950_s14, 128, %s1948_s17, %s862_s24  }
 0x2b3 PF: > { %s907_s13 = sand.u32 1, %s1498_s18   ;;  %p2034_p7 = scmp.ne.s32.totalorder %s2015_s27, 0 }
 0x2b4   : > { %p2035_p12 = scmp.ge.s32.totalorder %s1518_s23, 2  ;;  %s908_s15 = scalar_lea.sflag [#allocation6], %s907_s13 }
 0x2b6   : > { %p1187_p1 = pnand %p2035_p12, %p2034_p7 }
 0x2b8   : > { %1489 = dma.done.wait (!%p1187_p1), %s908_s15, 128  }
 0x2b9   : > { %1491 = vsyncadd (!%p1187_p1), %s908_s15, 4294967168  ;;  %s917_s25 = scalar_lea.sflag [#allocation14], %s907_s13 }
 0x2ba   : > { %1493 = dma.done.wait (!%p1187_p1), %s917_s25, 128  }
 0x2bb   : > { %1495 = vsyncadd (!%p1187_p1), %s917_s25, 4294967168  ;;  %s29_s23 = sadd.s32 1, %s1518_s23   ;;  %s2036_s6 = sld [smem:[#allocation23_spill]] }
 0x2bc   : > { %p26_p8 = scmp.ge.s32.totalorder %s29_s23, 4   ;;  %s2037_s21 = sld [smem:[#allocation21_spill]] }
 0x2bd   : > { %s2038_s22 = sld [smem:[#allocation22_spill]]  ;;  %s2039_s18 = smov %s1502_s19 }
 0x2be   : > { %s2040_s19 = smov %s1506_s20  ;;  %28 = sbr.rel (!%p26_p8) target bundleno = 15 (0xf), region = 133 }
 0x2c1   : > { %s2041_s20 = smov %s2036_s6 }
 0x2c5   :  { %922 = vsyncpa [#allocation5], 1 }
 0x2c6   :  { %924 = vsyncpa [#allocation5 + $0x1], 1 }
 0x2c7   :  { %925 = vsyncpa [#allocation8], 1 }
 0x2c8   :  { %927 = vsyncpa [#allocation8 + $0x1], 1 }
 0x2c9   :  { %928 = vsyncpa [#allocation11], 1 }
 0x2ca   :  { %929 = vsyncpa [#allocation6], 1 }
 0x2cb   :  { %931 = vsyncpa [#allocation6 + $0x1], 1 }
 0x2cc   :  { %932 = vsyncpa [#allocation14], 1 }
 0x2cd   :  { %934 = vsyncpa [#allocation14 + $0x1], 1 }

</bundles_post_ra>
